<compile_context>
chip_gen: v7x
topology: tpu7x:2x2x1
jax: 0.10.0
libtpu: 0.0.40
codegen_flags: <defaults>
</compile_context>

<pallas_src>
import functools
import math

import numpy as np

import jax
import jax.numpy as jnp
from jax import lax
from jax.experimental import pallas as pl
from jax.experimental.pallas import tpu as pltpu

# ----------------------------- config (from __init__) -----------------------
ROI_PER_IMAGE = 128
FG_RATIO = 0.5
CLS_FG_THRESH = 0.6
CLS_BG_THRESH = 0.45
CLS_BG_THRESH_LO = 0.1
HARD_BG_RATIO = 0.8
ROT_RANGE = -np.pi / 4
LOC_RANGE = 1.5
BEV_RANGE = (0.0, -40.0, 70.4, 40.0)

LANE_CHUNK = 256                 # lane tile per grid step (multiple of 128)
GT_CHUNK = 8                     # GT rows per reduction chunk (one f32 vreg)
M_BUCKETS = (8, 16, 32, 64, 128)
N_BUCKETS = (512, 768, 1024)     # all multiples of LANE_CHUNK


def _round_up(x, m):
    return ((x + m - 1) // m) * m


def _m_bucket(m):
    for b in M_BUCKETS:
        if m <= b:
            return b
    raise ValueError("too many GT boxes per image: %d" % m)


def _n_bucket(n):
    for b in N_BUCKETS:
        if n <= b:
            return b
    return _round_up(n, LANE_CHUNK)


# ----------------------------- fused Pallas kernel ---------------------------
def _iou_argmax_kernel(cand_ref, gt_ref, pack_ref):
    """Per (image, lane-chunk) block.

    cand_ref : (8, LANE_CHUNK)  rows = [xmin,xmax,ymin,ymax,zmin,zmax,vol1, 0]
               (candidates on lanes, corner/volume precomputed on the host;
               padding lanes are all-zero and simply ignored by the host).
    gt_ref   : (M_PAD, 8)       cols = [xmin,xmax,ymin,ymax,zmin,zmax,vol2,valid]
               (GT on sublanes).
    pack_ref : (8, LANE_CHUNK)  row 0 = max IoU over GT,
                                row 1 = first-argmax GT index (as float, exact),
                                rows 2..7 = UNWRITTEN (garbage by design).
    """
    c = cand_ref[...]
    xmin, xmax = c[0:1, :], c[1:2, :]
    ymin, ymax = c[2:3, :], c[3:4, :]
    zmin, zmax = c[4:5, :], c[5:6, :]
    vol1 = c[6:7, :]

    n = c.shape[1]
    m_pad = gt_ref.shape[0]

    max_acc = jnp.full((1, n), -1.0, jnp.float32)
    arg_acc = jnp.zeros((1, n), jnp.float32)

    # TODO(synk): boxes_iou3d_gpu's rotated-BEV polygon clipping is
    # approximated by axis-aligned BEV overlap (exact 3D IoU only for ry == 0).
    for ci in range(m_pad // GT_CHUNK):            # static unroll, small tiles
        g = gt_ref[ci * GT_CHUNK:(ci + 1) * GT_CHUNK, :]
        gxmin, gxmax = g[:, 0:1], g[:, 1:2]
        gymin, gymax = g[:, 2:3], g[:, 3:4]
        gzmin, gzmax = g[:, 4:5], g[:, 5:6]
        gvol, gvalid = g[:, 6:7], g[:, 7:8]

        ox = jnp.maximum(jnp.minimum(xmax, gxmax) - jnp.maximum(xmin, gxmin), 0.0)
        oy = jnp.maximum(jnp.minimum(ymax, gymax) - jnp.maximum(ymin, gymin), 0.0)
        oz = jnp.maximum(jnp.minimum(zmax, gzmax) - jnp.maximum(zmin, gzmin), 0.0)

        inter = ox * oy * oz                                   # (GT_CHUNK, n)
        denom = jnp.maximum(vol1 + gvol - inter, 1e-7)
        iou = inter * pl.reciprocal(denom)                     # exact, on EUP
        iou = jnp.where(gvalid > 0.5, iou, -1.0)               # pad rows lose

        cmax = jnp.max(iou, axis=0, keepdims=True)             # (1, n)
        ids = lax.broadcasted_iota(jnp.int32, iou.shape, 0) + ci * GT_CHUNK
        carg = jnp.min(jnp.where(iou == cmax, ids, m_pad),
                       axis=0, keepdims=True).astype(jnp.float32)

        better = cmax > max_acc        # strict > keeps the FIRST max (torch.max)
        arg_acc = jnp.where(better, carg, arg_acc)
        max_acc = jnp.maximum(max_acc, cmax)

    pack_ref[0:1, :] = max_acc         # lane-dense row stores; rows 2..7 unwritten
    pack_ref[1:2, :] = arg_acc         # exact float for indices < 2^24


@functools.lru_cache(maxsize=None)
def _build_iou_call(batch, n_pad, m_pad):
    n_tiles = n_pad // LANE_CHUNK
    cand_spec = pl.BlockSpec((None, 8, LANE_CHUNK), lambda b, j: (b, 0, j))
    gt_spec = pl.BlockSpec((None, m_pad, 8), lambda b, j: (b, 0, 0))
    out_spec = pl.BlockSpec((None, 8, LANE_CHUNK), lambda b, j: (b, 0, j))
    return pl.pallas_call(
        _iou_argmax_kernel,
        grid=(batch, n_tiles),
        in_specs=[cand_spec, gt_spec],
        out_specs=out_spec,
        out_shape=jax.ShapeDtypeStruct((batch, 8, n_pad), jnp.float32),
        compiler_params=pltpu.CompilerParams(
            dimension_semantics=("parallel", "parallel")),
    )


def fused_iou_argmax(cand_np, gt_np):
    """One device dispatch for the whole batch; returns the packed slab."""
    call = _build_iou_call(cand_np.shape[0], cand_np.shape[2], gt_np.shape[1])
    pack = call(jnp.asarray(cand_np), jnp.asarray(gt_np))
    pack = jax.block_until_ready(pack)
    return np.asarray(pack)


# ----------------------------- host-side module -----------------------------
class ProposalTargetLayerPallas:
    """ProposalTargetLayer.forward; device hot path = one batched Pallas call."""

    def __init__(self, seed=0):
        # TODO(synk): dynamic-shape subsampling (nonzero / permutation /
        # randint gathers) has no static-shape Pallas equivalent; it runs
        # host-side with a deterministic numpy RNG.
        self.rng = np.random.RandomState(seed)

    # ---- sample_bg_inds ----
    def sample_bg_inds(self, hard_bg_inds, easy_bg_inds, bg_rois_per_this_image,
                       hard_bg_ratio):
        if len(hard_bg_inds) > 0 and len(easy_bg_inds) > 0:
            hard_num = min(int(bg_rois_per_this_image * hard_bg_ratio),
                           len(hard_bg_inds))
            easy_num = bg_rois_per_this_image - hard_num
            hard = hard_bg_inds[self.rng.randint(0, len(hard_bg_inds),
                                                 size=hard_num)]
            easy = easy_bg_inds[self.rng.randint(0, len(easy_bg_inds),
                                                 size=easy_num)]
            return np.concatenate([hard, easy], axis=0)
        elif len(hard_bg_inds) > 0:
            return hard_bg_inds[self.rng.randint(0, len(hard_bg_inds),
                                                 size=bg_rois_per_this_image)]
        elif len(easy_bg_inds) > 0:
            return easy_bg_inds[self.rng.randint(0, len(easy_bg_inds),
                                                 size=bg_rois_per_this_image)]
        else:
            raise NotImplementedError

    # ---- subsample_rois ----
    def subsample_rois(self, max_overlaps):
        fg_rois_per_image = int(np.round(FG_RATIO * ROI_PER_IMAGE))
        fg_inds = np.nonzero(max_overlaps >= CLS_FG_THRESH)[0]
        easy_bg_inds = np.nonzero(max_overlaps < CLS_BG_THRESH_LO)[0]
        hard_bg_inds = np.nonzero((max_overlaps < CLS_BG_THRESH) &
                                  (max_overlaps >= CLS_BG_THRESH_LO))[0]
        fg_num = len(fg_inds)
        bg_num = len(hard_bg_inds) + len(easy_bg_inds)

        if fg_num > 0 and bg_num > 0:
            fg_this = min(fg_rois_per_image, fg_num)
            perm = self.rng.permutation(fg_num)
            fg_inds = fg_inds[perm[:fg_this]]
            bg_this = ROI_PER_IMAGE - fg_this
            bg_inds = self.sample_bg_inds(hard_bg_inds, easy_bg_inds,
                                          bg_this, HARD_BG_RATIO)
        elif fg_num > 0 and bg_num == 0:
            rand_num = np.floor(self.rng.rand(ROI_PER_IMAGE) * fg_num
                                ).astype(np.int64)
            fg_inds = fg_inds[rand_num]
            bg_inds = np.array([], dtype=np.int64)
        elif bg_num > 0 and fg_num == 0:
            fg_inds = np.array([], dtype=np.int64)
            bg_inds = self.sample_bg_inds(hard_bg_inds, easy_bg_inds,
                                          ROI_PER_IMAGE, HARD_BG_RATIO)
        else:
            raise NotImplementedError('ERROR: FG=%d, BG=%d' % (fg_num, bg_num))
        return np.concatenate([fg_inds, bg_inds], axis=0).astype(np.int64)

    # ---- forward ----
    def forward(self, rois, gt_boxes):
        batch = len(rois)

        # 1) host: augmentation (noise add + BEV keep) + candidate sets.
        #    Matches the torch control flow: aug = tile(cat(roi, gt), times),
        #    add noise, BEV-filter, then append the originals.
        per_image = []
        for cur_roi, cur_gt in zip(rois, gt_boxes):
            cur_roi = np.asarray(cur_roi, np.float32)[:, :7]
            cur_gt = np.asarray(cur_gt, np.float32)
            assert len(cur_gt) > 0
            assert len(cur_gt) <= M_BUCKETS[-1]

            base = np.concatenate([cur_roi, cur_gt[:, :7]], axis=0)
            k = base.shape[0]
            times = math.ceil(ROI_PER_IMAGE * 2 / k)
            aug = np.tile(base, (times, 1)).astype(np.float32)
            n_noised = aug.shape[0]
            rot_noise = (self.rng.rand(n_noised) - 0.5) / 0.5 * ROT_RANGE
            loc_noise = (self.rng.rand(n_noised, 2) - 0.5) / 0.5 * LOC_RANGE
            aug[:, :2] += loc_noise.astype(np.float32)
            aug[:, 6] += rot_noise.astype(np.float32)
            keep = ((aug[:, 0] > BEV_RANGE[0]) & (aug[:, 0] < BEV_RANGE[2]) &
                    (aug[:, 1] > BEV_RANGE[1]) & (aug[:, 1] < BEV_RANGE[3]))
            cand = np.concatenate([aug[keep], base], axis=0)  # kept-noised, then originals
            per_image.append((cand, cur_gt))

        # static buckets -> one Mosaic compile, reused across calls
        n_pad = _n_bucket(max(c.shape[0] for c, _ in per_image))
        m_pad = _m_bucket(max(g.shape[0] for _, g in per_image))

        # pack corner/volume slabs (candidates on lanes, GT on sublanes)
        cand_slab = np.zeros((batch, 8, n_pad), np.float32)
        gt_slab = np.zeros((batch, m_pad, 8), np.float32)
        for b, (cand, gt) in enumerate(per_image):
            n = cand.shape[0]
            half = cand[:, 3:6] * 0.5
            cand_slab[b, 0, :n] = cand[:, 0] - half[:, 0]
            cand_slab[b, 1, :n] = cand[:, 0] + half[:, 0]
            cand_slab[b, 2, :n] = cand[:, 1] - half[:, 1]
            cand_slab[b, 3, :n] = cand[:, 1] + half[:, 1]
            cand_slab[b, 4, :n] = cand[:, 2] - half[:, 2]
            cand_slab[b, 5, :n] = cand[:, 2] + half[:, 2]
            cand_slab[b, 6, :n] = cand[:, 3] * cand[:, 4] * cand[:, 5]

            m = gt.shape[0]
            ghalf = gt[:, 3:6] * 0.5
            gt_slab[b, :m, 0] = gt[:, 0] - ghalf[:, 0]
            gt_slab[b, :m, 1] = gt[:, 0] + ghalf[:, 0]
            gt_slab[b, :m, 2] = gt[:, 1] - ghalf[:, 1]
            gt_slab[b, :m, 3] = gt[:, 1] + ghalf[:, 1]
            gt_slab[b, :m, 4] = gt[:, 2] - ghalf[:, 2]
            gt_slab[b, :m, 5] = gt[:, 2] + ghalf[:, 2]
            gt_slab[b, :m, 6] = gt[:, 3] * gt[:, 4] * gt[:, 5]
            gt_slab[b, :m, 7] = 1.0

        # 2) device: ONE fused, batched Pallas dispatch (IoU + max/argmax)
        pack = fused_iou_argmax(cand_slab, gt_slab)

        # 3) host: dynamic-shape subsampling per image
        batch_rois, batch_labels = [], []
        for b, (cand, gt) in enumerate(per_image):
            n = cand.shape[0]
            max_ov = np.array(pack[b, 0, :n], copy=True)
            gt_assign = np.rint(pack[b, 1, :n]).astype(np.int64)

            sampled = self.subsample_rois(max_ov)
            sel_rois = cand[sampled]                      # (ROI_PER_IMAGE, 7)
            sel_overs = max_ov[sampled]
            _sel_gt = gt[gt_assign[sampled]]              # gt_of_roi (unused output)
            labels = (sel_overs > CLS_FG_THRESH).astype(np.int32)
            # The reference also writes -1 into sel_overs over the ignore band
            # (CLS_BG_THRESH, CLS_FG_THRESH); sel_overs is not part of
            # forward()'s return value, so that write has no observable effect.
            batch_rois.append(sel_rois)
            batch_labels.append(labels)
        return batch_rois, batch_labels


# ------------------------------------ main -----------------------------------
if __name__ == "__main__":
    key = jax.random.PRNGKey(0)
    batch = 2
    n_gt, n_roi = 4, 12

    rois_list, gt_list = [], []
    for b in range(batch):
        kb = jax.random.fold_in(key, b)
        kg1, kg2, kg3, kr1 = jax.random.split(kb, 4)
        gt_xyz = jax.random.uniform(kg1, (n_gt, 3),
                                    minval=jnp.array([5.0, -30.0, -1.0]),
                                    maxval=jnp.array([60.0, 30.0, 1.0]))
        gt_dims = jax.random.uniform(kg2, (n_gt, 3), minval=1.5, maxval=4.0)
        gt_ry = jax.random.uniform(kg3, (n_gt, 1), minval=-np.pi, maxval=np.pi)
        gt = jnp.concatenate([gt_xyz, gt_dims, gt_ry], axis=1)

        rep = int(np.ceil(n_roi / n_gt))
        base = jnp.tile(gt, (rep, 1))[:n_roi]
        jitter = jax.random.uniform(kr1, (n_roi, 7), minval=-0.3, maxval=0.3)
        rois = base + jitter

        gt_list.append(np.asarray(gt, dtype=np.float32))
        rois_list.append(np.asarray(rois, dtype=np.float32))

    layer = ProposalTargetLayerPallas(seed=0)
    batch_rois, batch_labels = layer.forward(rois_list, gt_list)

    for r, l in zip(batch_rois, batch_labels):
        assert r.shape == (ROI_PER_IMAGE, 7), r.shape
        assert l.shape == (ROI_PER_IMAGE,), l.shape
        assert l.dtype == np.int32

    print("KERNEL_OK")
</pallas_src>

<mosaic_0001>
module attributes {stable_mosaic.version = 11 : i64} {
  func.func @_iou_argmax_kernel(%arg0: i32, %arg1: i32, %arg2: memref<1x8x256xf32, #tpu.memory_space<vmem>>, %arg3: memref<1x8x8xf32, #tpu.memory_space<vmem>>, %arg4: memref<1x8x256xf32, #tpu.memory_space<vmem>>) attributes {dimension_semantics = [#tpu.dimension_semantics<parallel>, #tpu.dimension_semantics<parallel>], iteration_bounds = array<i64: 2, 2>, scalar_prefetch = 0 : i64, scratch_operands = 0 : i64, tpu.core_type = #tpu.core_type<tc>, window_params = [{transform_indices = @transform_0, window_bounds = array<i64: 1, 8, 256>}, {transform_indices = @transform_1, window_bounds = array<i64: 1, 8, 8>}, {transform_indices = @transform_2, window_bounds = array<i64: 1, 8, 256>}]} {
    %c0 = arith.constant 0 : index
    %c0_0 = arith.constant 0 : index
    %c0_1 = arith.constant 0 : index
    %0 = vector.load %arg2[%c0, %c0_0, %c0_1] : memref<1x8x256xf32, #tpu.memory_space<vmem>>, vector<1x8x256xf32>
    %1 = vector.shape_cast %0 : vector<1x8x256xf32> to vector<8x256xf32>
    %2 = vector.extract_strided_slice %1 {offsets = [0, 0], sizes = [1, 256], strides = [1, 1]} : vector<8x256xf32> to vector<1x256xf32>
    %3 = vector.extract_strided_slice %1 {offsets = [1, 0], sizes = [1, 256], strides = [1, 1]} : vector<8x256xf32> to vector<1x256xf32>
    %4 = vector.extract_strided_slice %1 {offsets = [2, 0], sizes = [1, 256], strides = [1, 1]} : vector<8x256xf32> to vector<1x256xf32>
    %5 = vector.extract_strided_slice %1 {offsets = [3, 0], sizes = [1, 256], strides = [1, 1]} : vector<8x256xf32> to vector<1x256xf32>
    %6 = vector.extract_strided_slice %1 {offsets = [4, 0], sizes = [1, 256], strides = [1, 1]} : vector<8x256xf32> to vector<1x256xf32>
    %7 = vector.extract_strided_slice %1 {offsets = [5, 0], sizes = [1, 256], strides = [1, 1]} : vector<8x256xf32> to vector<1x256xf32>
    %8 = vector.extract_strided_slice %1 {offsets = [6, 0], sizes = [1, 256], strides = [1, 1]} : vector<8x256xf32> to vector<1x256xf32>
    %cst = arith.constant -1.000000e+00 : f32
    %9 = vector.broadcast %cst : f32 to vector<1x256xf32>
    %cst_2 = arith.constant 0.000000e+00 : f32
    %10 = vector.broadcast %cst_2 : f32 to vector<1x256xf32>
    %c0_3 = arith.constant 0 : index
    %c0_4 = arith.constant 0 : index
    %c0_5 = arith.constant 0 : index
    %11 = vector.load %arg3[%c0_3, %c0_4, %c0_5] : memref<1x8x8xf32, #tpu.memory_space<vmem>>, vector<1x8x8xf32>
    %12 = vector.shape_cast %11 : vector<1x8x8xf32> to vector<8x8xf32>
    %13 = vector.extract_strided_slice %12 {offsets = [0, 0], sizes = [8, 1], strides = [1, 1]} : vector<8x8xf32> to vector<8x1xf32>
    %14 = vector.extract_strided_slice %12 {offsets = [0, 1], sizes = [8, 1], strides = [1, 1]} : vector<8x8xf32> to vector<8x1xf32>
    %15 = vector.extract_strided_slice %12 {offsets = [0, 2], sizes = [8, 1], strides = [1, 1]} : vector<8x8xf32> to vector<8x1xf32>
    %16 = vector.extract_strided_slice %12 {offsets = [0, 3], sizes = [8, 1], strides = [1, 1]} : vector<8x8xf32> to vector<8x1xf32>
    %17 = vector.extract_strided_slice %12 {offsets = [0, 4], sizes = [8, 1], strides = [1, 1]} : vector<8x8xf32> to vector<8x1xf32>
    %18 = vector.extract_strided_slice %12 {offsets = [0, 5], sizes = [8, 1], strides = [1, 1]} : vector<8x8xf32> to vector<8x1xf32>
    %19 = vector.extract_strided_slice %12 {offsets = [0, 6], sizes = [8, 1], strides = [1, 1]} : vector<8x8xf32> to vector<8x1xf32>
    %20 = vector.extract_strided_slice %12 {offsets = [0, 7], sizes = [8, 1], strides = [1, 1]} : vector<8x8xf32> to vector<8x1xf32>
    %21 = vector.broadcast %3 : vector<1x256xf32> to vector<8x256xf32>
    %22 = vector.broadcast %14 : vector<8x1xf32> to vector<8x256xf32>
    %23 = arith.minimumf %21, %22 : vector<8x256xf32>
    %24 = vector.broadcast %2 : vector<1x256xf32> to vector<8x256xf32>
    %25 = vector.broadcast %13 : vector<8x1xf32> to vector<8x256xf32>
    %26 = arith.maximumf %24, %25 : vector<8x256xf32>
    %27 = arith.subf %23, %26 : vector<8x256xf32>
    %cst_6 = arith.constant 0.000000e+00 : f32
    %28 = vector.broadcast %cst_6 : f32 to vector<8x256xf32>
    %29 = arith.maximumf %27, %28 : vector<8x256xf32>
    %30 = vector.broadcast %5 : vector<1x256xf32> to vector<8x256xf32>
    %31 = vector.broadcast %16 : vector<8x1xf32> to vector<8x256xf32>
    %32 = arith.minimumf %30, %31 : vector<8x256xf32>
    %33 = vector.broadcast %4 : vector<1x256xf32> to vector<8x256xf32>
    %34 = vector.broadcast %15 : vector<8x1xf32> to vector<8x256xf32>
    %35 = arith.maximumf %33, %34 : vector<8x256xf32>
    %36 = arith.subf %32, %35 : vector<8x256xf32>
    %cst_7 = arith.constant 0.000000e+00 : f32
    %37 = vector.broadcast %cst_7 : f32 to vector<8x256xf32>
    %38 = arith.maximumf %36, %37 : vector<8x256xf32>
    %39 = vector.broadcast %7 : vector<1x256xf32> to vector<8x256xf32>
    %40 = vector.broadcast %18 : vector<8x1xf32> to vector<8x256xf32>
    %41 = arith.minimumf %39, %40 : vector<8x256xf32>
    %42 = vector.broadcast %6 : vector<1x256xf32> to vector<8x256xf32>
    %43 = vector.broadcast %17 : vector<8x1xf32> to vector<8x256xf32>
    %44 = arith.maximumf %42, %43 : vector<8x256xf32>
    %45 = arith.subf %41, %44 : vector<8x256xf32>
    %cst_8 = arith.constant 0.000000e+00 : f32
    %46 = vector.broadcast %cst_8 : f32 to vector<8x256xf32>
    %47 = arith.maximumf %45, %46 : vector<8x256xf32>
    %48 = arith.mulf %29, %38 : vector<8x256xf32>
    %49 = arith.mulf %48, %47 : vector<8x256xf32>
    %50 = vector.broadcast %8 : vector<1x256xf32> to vector<8x256xf32>
    %51 = vector.broadcast %19 : vector<8x1xf32> to vector<8x256xf32>
    %52 = arith.addf %50, %51 : vector<8x256xf32>
    %53 = arith.subf %52, %49 : vector<8x256xf32>
    %cst_9 = arith.constant 1.000000e-07 : f32
    %54 = vector.broadcast %cst_9 : f32 to vector<8x256xf32>
    %55 = arith.maximumf %53, %54 : vector<8x256xf32>
    %56 = tpu.reciprocal %55 : vector<8x256xf32> -> vector<8x256xf32>
    %57 = arith.mulf %49, %56 : vector<8x256xf32>
    %cst_10 = arith.constant 5.000000e-01 : f32
    %58 = vector.broadcast %cst_10 : f32 to vector<8x1xf32>
    %59 = arith.cmpf ogt, %20, %58 : vector<8x1xf32>
    %cst_11 = arith.constant -1.000000e+00 : f32
    %60 = vector.shape_cast %59 : vector<8x1xi1> to vector<8x1xi1>
    %61 = vector.broadcast %60 : vector<8x1xi1> to vector<8x256xi1>
    %62 = vector.broadcast %cst_11 : f32 to vector<8x256xf32>
    %63 = arith.select %61, %57, %62 : vector<8x256xi1>, vector<8x256xf32>
    %cst_12 = arith.constant dense<0xFF800000> : vector<256xf32>
    %64 = vector.multi_reduction <maximumf>, %63, %cst_12 [0] : vector<8x256xf32> to vector<256xf32>
    %65 = vector.shape_cast %64 : vector<256xf32> to vector<1x256xf32>
    %66 = tpu.iota {dimensions = array<i32: 0>} : vector<8x256xi32>
    %c0_i32 = arith.constant 0 : i32
    %67 = vector.broadcast %c0_i32 : i32 to vector<8x256xi32>
    %68 = arith.addi %66, %67 : vector<8x256xi32>
    %69 = vector.broadcast %65 : vector<1x256xf32> to vector<8x256xf32>
    %70 = arith.cmpf oeq, %63, %69 : vector<8x256xf32>
    %c8_i32 = arith.constant 8 : i32
    %71 = vector.broadcast %c8_i32 : i32 to vector<8x256xi32>
    %72 = arith.select %70, %68, %71 : vector<8x256xi1>, vector<8x256xi32>
    %cst_13 = arith.constant dense<2147483647> : vector<256xi32>
    %73 = vector.multi_reduction <minsi>, %72, %cst_13 [0] : vector<8x256xi32> to vector<256xi32>
    %74 = vector.shape_cast %73 : vector<256xi32> to vector<1x256xi32>
    %75 = arith.sitofp %74 : vector<1x256xi32> to vector<1x256xf32>
    %76 = arith.cmpf ogt, %65, %9 : vector<1x256xf32>
    %77 = arith.select %76, %75, %10 : vector<1x256xi1>, vector<1x256xf32>
    %78 = arith.maximumf %9, %65 : vector<1x256xf32>
    %c0_14 = arith.constant 0 : index
    %c0_15 = arith.constant 0 : index
    %c0_16 = arith.constant 0 : index
    %79 = vector.load %arg4[%c0_14, %c0_15, %c0_16] : memref<1x8x256xf32, #tpu.memory_space<vmem>>, vector<1x1x256xf32>
    %80 = vector.shape_cast %79 : vector<1x1x256xf32> to vector<1x256xf32>
    %81 = vector.shape_cast %78 : vector<1x256xf32> to vector<1x1x256xf32>
    tpu.vector_store %arg4[%c0_14, %c0_15, %c0_16], %81 {strides = array<i32>} : memref<1x8x256xf32, #tpu.memory_space<vmem>>, vector<1x1x256xf32>,
    %c0_17 = arith.constant 0 : index
    %c1 = arith.constant 1 : index
    %c0_18 = arith.constant 0 : index
    %82 = vector.load %arg4[%c0_17, %c1, %c0_18] : memref<1x8x256xf32, #tpu.memory_space<vmem>>, vector<1x1x256xf32>
    %83 = vector.shape_cast %82 : vector<1x1x256xf32> to vector<1x256xf32>
    %84 = vector.shape_cast %77 : vector<1x256xf32> to vector<1x1x256xf32>
    tpu.vector_store %arg4[%c0_17, %c1, %c0_18], %84 {strides = array<i32>} : memref<1x8x256xf32, #tpu.memory_space<vmem>>, vector<1x1x256xf32>,
    return
  }
  func.func @transform_0(%arg0: i32, %arg1: i32) -> (i32, i32, i32) {
    %c0_i32 = arith.constant 0 : i32
    %c0_i32_0 = arith.constant 0 : i32
    return %arg0, %c0_i32, %arg1 : i32, i32, i32
  }
  func.func @transform_1(%arg0: i32, %arg1: i32) -> (i32, i32, i32) {
    %c0_i32 = arith.constant 0 : i32
    %c0_i32_0 = arith.constant 0 : i32
    %c0_i32_1 = arith.constant 0 : i32
    return %arg0, %c0_i32, %c0_i32_0 : i32, i32, i32
  }
  func.func @transform_2(%arg0: i32, %arg1: i32) -> (i32, i32, i32) {
    %c0_i32 = arith.constant 0 : i32
    %c0_i32_0 = arith.constant 0 : i32
    return %arg0, %c0_i32, %arg1 : i32, i32, i32
  }
}

</mosaic_0001>

<bundles_post_ra>
// kernel: tpu_custom_call.1
= control target key start
LH: loop header
LB: loop body
LE: loop exit
PB: predicated region body
PF: predicated region fallthrough
CT: control target
= control target key end

     0   :  { %s1263_s0 = inlined_call_operand.hbm [shape: f32[2,8,512], index: 0, kind: input, shape index: {}]   ;;  %s1264_s1 = inlined_call_operand.hbm [shape: f32[2,8,8], index: 1, kind: input, shape index: {}]   ;;  %s1265_s2 = inlined_call_operand.hbm [shape: f32[2,8,512], index: 2, kind: output, shape index: {}]  }
   0x1   :  { %1275 = sst [smem:[#allocation14_spill]] %s1265_s2 }
   0x2   :  { %7 = vsyncpa [#allocation3], 0 }
   0x3   :  { %9 = vsyncpa [#allocation3 + $0x1], 0 }
   0x4   :  { %10 = vsyncpa [#allocation6], 0 }
   0x5   :  { %12 = vsyncpa [#allocation6 + $0x1], 0 }
   0x6   :  { %13 = vsyncpa [#allocation4], 0 }
   0x7   :  { %15 = vsyncpa [#allocation4 + $0x1], 0  ;;  %s932_s9 = smov 0   ;;  %s934_s10 = smov 0  }
   0x8   :  { %s936_s11 = smov 0   ;;  %s938_s12 = smov 0  }
   0x9   :  { %s940_s13 = smov 0   ;;  %s942_s14 = smov 0  }
   0xa   :  { %s944_s15 = smov 0   ;;  %s946_s16 = smov 0  }
   0xb   :  { %s948_s17 = smov 0   ;;  %s950_s18 = smov 0  }
   0xc   :  { %s952_s19 = smov 0  }
   0xd LB: > { %1276 = sst [smem:[#allocation11_spill]] %s875_s12  ;;  %s567_s20 = sadd.s32 4294967295, %s903_s19   ;;  %s903_s19 = sphi %s952_s19, %s21_s19   ;;  %s899_s18 = sphi %s950_s18, %s1312_s18   ;;  %s895_s17 = sphi %s948_s17, %s1311_s17   ;;  %s891_s16 = sphi %s946_s16, %s1310_s16   ;;  %s887_s15 = sphi %s944_s15, %s1309_s15   ;;  %s883_s14 = sphi %s942_s14, %s1308_s14   ;;  %s879_s13 = sphi %s940_s13, %s1307_s13   ;;  %s875_s12 = sphi %s938_s12, %s1306_s12   ;;  %s871_s11 = sphi %s936_s11, %s1305_s11   ;;  %s867_s10 = sphi %s934_s10, %s1304_s10   ;;  %s863_s9 = sphi %s932_s9, %s1303_s9  }
   0xe   : > { %s568_s21 = sadd.s32 4294967294, %s903_s19   ;;  %s30_s22 = sadd.s32 1, %s895_s17 }
   0xf   : > { %s33_s23 = sadd.s32 1, %s899_s18  ;;  %p31_p0 = scmp.ge.s32.totalorder %s30_s22, 2 }
  0x10   : > { %s42_s24 = sadd.s32 1, %s883_s14  ;;  %p49_p1 = scmp.ne.s32.totalorder %s883_s14, %s879_s13 }
  0x11   : > { %p1270_p2 = scmp.eq.s32.totalorder %s903_s19, 0  ;;  %s1314_s22 = smov (%p31_p0, %s30_s22), 0 }
  0x12   : > { %1277 = sst [smem:[#allocation12_spill]] %s1314_s22  ;;  %s1316_s23 = smov (!%p31_p0, %s33_s23), %s899_s18 }
  0x13   : > { %s38_s25 = ssub.s32 %s895_s17, %s1314_s22  ;;  %p1002_p3 = por %p1270_p2, %p49_p1 }
  0x14   : > { %p35_p4 = scmp.ge.s32.totalorder %s1316_s23, 2  ;;  %p55_p5 = scmp.ne.s32.totalorder %s879_s13, %s875_s12 }
  0x15   : > { %p1008_p6 = scmp.eq.s32.totalorder %s567_s20, 0  ;;  %p107_p7 = scmp.eq.s32.totalorder %s567_s20, 3 }
  0x16   : > { %s1318_s23 = smov (%p35_p4, %s1316_s23), 0  ;;  %p113_p10 = scmp.eq.s32.totalorder %s568_s21, 3 }
  0x17   : > { %1280 = sst [smem:[#allocation13_spill]] %s1318_s23  ;;  %p1016_p8 = por %p1008_p6, %p55_p5 }
  0x18   : > { %p1020_p9 = por %p107_p7, %p49_p1  ;;  %s1026_s30 = ssub.s32 %s899_s18, %s1318_s23 }
  0x19   : > { %s1281_s28 = scalar_select %p1016_p8, 1, 0 }
  0x1a   : > { %s1282_s29 = scalar_select %p1020_p9, 1, 0 }
  0x1b   : > { %s39_s3 = sor.u32 %s38_s25, %s1026_s30  ;;  %p1030_p13 = por %p113_p10, %p55_p5 }
  0x1c   : > { %p40_p12 = scmp.eq.s32.totalorder %s39_s3, 0  ;;  %p1271_p0 = scmp.lt.s32.totalorder %s903_s19, 4 }
  0x1d   : > { %s1283_s4 = scalar_select %p1030_p13, 1, 0 }
  0x1e   : > { %s1036_s5 = scalar_select %p40_p12, %s883_s14, %s42_s24  }
  0x1f   : > { %s133_s6 = sand.u32 1, %s883_s14   ;;  %s572_s7 = sshll.u32 %s895_s17, 1 }
  0x20   : > { %s571_s8 = sshll.u32 %s133_s6, 4  ;;  %s573_s20 = sshll.u32 %s899_s18, 2 }
  0x21   : > { %s143_s23 = sadd.s32 %s573_s20, %s572_s7  ;;  %s137_s21 = scalar_lea.vmem [#allocation2], %s571_s8 }
  0x22   : > { %s147_s25 = sshll.u32 %s137_s21, 4  ;;  %s574_s22 = sshll.u32 %s143_s23, 7  ;;  %s1041_s25 = int_to_ptr.vmem [resolvable:$true] %s147_s25 }
  0x23   : > { %s1046_s2 = scalar_lea.hbm %s1263_s0, %s574_s22  ;;  %p1052_p1 = pnand %p1271_p0, %p1002_p3 }
  0x24   : > { %s134_s23 = scalar_lea.sflag [#allocation3], %s133_s6  ;;  %s717_s7 = scalar_lea.hbm %s1046_s2, 256 }
  0x25   : > { %p718_p7 = scmp.ne.s32.totalorder %s1046_s2, %s717_s7  ;;  %p719_p10 = pneg %p1052_p1 }
  0x26   : > { %s722_s26 = scalar_lea.hbm %s1263_s0, 1024  ;;  %p723_p3 = scmp.lt.u32.totalorder %s1046_s2, %s1263_s0 }
  0x27   : > { %p720_p12 = pnand %p719_p10, %p718_p7  ;;  %p724_p0 = scmp.lt.u32.totalorder %s722_s26, %s717_s7 }
  0x28   : > { %p726_p4 = scmp.lt.u32.totalorder %s717_s7, %s1046_s2 }
  0x29   : > { %p721_p2 = pneg %p720_p12  ;;  %p725_p11 = por %p724_p0, %p723_p3 }
  0x2b   : > { %p727_p5 = por %p726_p4, %p725_p11 }
  0x2d   : > { %p728_p13 = pnand %p727_p5, %p721_p2 }
  0x2f   : > { %731 = shalt.err (!%p728_p13)
}
  0x30   : > { %s732_s6 = scalar_lea.vmem %s1041_s25, 256  ;;  %s905_s21 = smov [#allocation2]  }
  0x31   : > { %p733_p7 = scmp.ne.s32.totalorder %s1041_s25, %s732_s6  ;;  %s737_s3 = sshll.u32 %s905_s21, 4  ;;  %s738_s3 = int_to_ptr.vmem [resolvable:$false] %s737_s3 }
  0x32   : > { %s739_s12 = scalar_lea.vmem %s738_s3, 512  ;;  %p740_p8 = scmp.lt.s32.totalorder %s1041_s25, %s738_s3 }
  0x33   : > { %p735_p12 = pnand %p733_p7, %p719_p10  ;;  %p741_p0 = scmp.lt.s32.totalorder %s739_s12, %s732_s6 }
  0x35   : > { %p736_p9 = pneg %p735_p12  ;;  %p742_p3 = por %p741_p0, %p740_p8 }
  0x37   : > { %p743_p11 = pnand %p742_p3, %p736_p9 }
  0x39   : > { %746 = shalt.err (!%p743_p11)
}
  0x3a   : > { %597 = dma.hbm_to_vmem [thread:$0]  (!%p1052_p1), %s1046_s2, 256, %s1041_s25, %s134_s23  }
  0x3b   : > { %p1285_p2 = scmp.lt.s32.totalorder %s903_s19, 5  ;;  %p1286_p8 = scmp.ge.s32.totalorder %s903_s19, 1 }
  0x3c   : > { %s68_s7 = sadd.s32 1, %s871_s11  ;;  %p75_p13 = scmp.ne.s32.totalorder %s871_s11, %s867_s10 }
  0x3d   : > { %p1087_p9 = pnand %p1286_p8, %p1285_p2  ;;  %p1288_p4 = scmp.eq.s32.totalorder %s1026_s30, 0 }
  0x3e   : > { %p1289_p5 = scmp.eq.s32.totalorder %s903_s19, 0  ;;  %p81_p7 = scmp.ne.s32.totalorder %s867_s10, %s863_s9 }
  0x3f   : > { %s1097_s22 = scalar_select %p1288_p4, %s871_s11, %s68_s7  }
  0x40   : > { %p77_p10 = por %p75_p13, %p1289_p5  ;;  %s154_s26 = sand.u32 1, %s871_s11  }
  0x41   : > { %s576_s8 = sshll.u32 %s899_s18, 7  ;;  %p1107_p12 = por %p81_p7, %p1008_p6 }
  0x42   : > { %s575_s2 = sshll.u32 %s154_s26, 3  ;;  %s1114_s6 = scalar_lea.hbm %s1264_s1, %s576_s8 }
  0x43   : > { %s1290_s20 = scalar_select %p1107_p12, 1, 0 }
  0x44   : > { %p1291_p1 = scmp.lt.s32.totalorder %s903_s19, 4  ;;  %s158_s27 = scalar_lea.vmem [#allocation5], %s575_s2 }
  0x45   : > { %s165_s30 = sshll.u32 %s158_s27, 4  ;;  %s155_s21 = scalar_lea.sflag [#allocation6], %s154_s26  ;;  %s1122_s30 = int_to_ptr.vmem [resolvable:$true] %s165_s30 }
  0x46   : > { %p1118_p0 = pnand %p1291_p1, %p77_p10  ;;  %s747_s3 = scalar_lea.hbm %s1114_s6, 128 }
  0x47   : > { %p748_p6 = scmp.ne.s32.totalorder %s1114_s6, %s747_s3  ;;  %s752_s8 = scalar_lea.hbm %s1264_s1, 256 }
  0x48   : > { %p749_p3 = pneg %p1118_p0  ;;  %p753_p8 = scmp.lt.u32.totalorder %s1114_s6, %s1264_s1 }
  0x49   : > { %p754_p13 = scmp.lt.u32.totalorder %s752_s8, %s747_s3  ;;  %p756_p5 = scmp.lt.u32.totalorder %s747_s3, %s1114_s6 }
  0x4a   : > { %p750_p11 = pnand %p749_p3, %p748_p6 }
  0x4b   : > { %p755_p4 = por %p754_p13, %p753_p8 }
  0x4c   : > { %p751_p2 = pneg %p750_p11 }
  0x4d   : > { %p757_p10 = por %p756_p5, %p755_p4 }
  0x4f   : > { %p758_p7 = pnand %p757_p10, %p751_p2 }
  0x51   : > { %761 = shalt.err (!%p758_p7)
}
  0x52   : > { %s762_s26 = scalar_lea.vmem %s1122_s30, 128  ;;  %s906_s2 = smov [#allocation5]  }
  0x53   : > { %p763_p1 = scmp.ne.s32.totalorder %s1122_s30, %s762_s26  ;;  %s767_s27 = sshll.u32 %s906_s2, 4  ;;  %s768_s27 = int_to_ptr.vmem [resolvable:$false] %s767_s27 }
  0x54   : > { %s769_s12 = scalar_lea.vmem %s768_s27, 256  ;;  %p770_p12 = scmp.lt.s32.totalorder %s1122_s30, %s768_s27 }
  0x55   : > { %p765_p6 = pnand %p763_p1, %p749_p3  ;;  %p771_p8 = scmp.lt.s32.totalorder %s769_s12, %s762_s26 }
  0x57   : > { %p766_p11 = pneg %p765_p6  ;;  %p772_p13 = por %p771_p8, %p770_p12 }
  0x59   : > { %p773_p4 = pnand %p772_p13, %p766_p11 }
  0x5b   : > { %776 = shalt.err (!%p773_p4)
}
  0x5c   : > { %600 = dma.hbm_to_vmem [thread:$0]  (!%p1118_p0), %s1114_s6, 128, %s1122_s30, %s155_s21  }
  0x5d   : > { %174 = sbr.rel (%p1087_p9) target bundleno = 321 (0x141), region = 28  ;;  %s1152_s3 = sand.u32 (!%p1087_p9), 1, %s879_s13  }
  0x5e   : > { %s578_s7 = sshll.u32 (!%p1087_p9), %s1152_s3, 4  ;;  %s177_s8 = scalar_lea.sflag (!%p1087_p9), [#allocation3], %s1152_s3 }
  0x5f   : > { %s1158_s25 = scalar_lea.vmem (!%p1087_p9), [#allocation2], %s578_s7  ;;  %p1293_p12 = scmp.ne.s32.totalorder (!%p1087_p9), %s1281_s28, 0 }
  0x64   : > { %850 = dma.done.wait (%p1293_p12), %s177_s8, 256  }
  0x65   : > { %852 = vsyncadd (%p1293_p12), %s177_s8, 4294967040  ;;  %s185_s24 = sand.u32 1, %s867_s10   ;;  %p1294_p9 = scmp.ne.s32.totalorder %s1290_s20, 0 }
  0x66   : > { %s579_s6 = sshll.u32 %s185_s24, 3  ;;  %s186_s9 = scalar_lea.sflag [#allocation6], %s185_s24 }
  0x67   : > { %s189_s30 = scalar_lea.vmem [#allocation5], %s579_s6 }
  0x68   : > { %854 = dma.done.wait (%p1294_p9), %s186_s9, 128  }
  0x69   : > { %856 = vsyncadd (%p1294_p9), %s186_s9, 4294967168  ;;  %v907_v0 = vmov 3   ;;  %v908_v1 = vmov 1   ;;  %v219_v2 = vld [vmem:[%s189_s30] sm:$0xff]  ;;  %v909_v3 = vmov 2   ;;  %v910_v4 = vmov 0  }
  0x6a   : > { %706 = vset.pattern.permute.xlu1 %v907_v0  ;;  %704 = vset.pattern.permute.xlu0 %v908_v1  ;;  %v911_v5 = vmov 5   ;;  %v912_v6 = vmov 4   ;;  %v913_v7 = vmov 6   ;;  %vm343_vm0 = vcmp.gt.f32.partialorder %v219_v2, 0.5  ;;  %v217_v14 = vld [vmem:[%s1158_s25] sm:$0xff]  ;;  %v218_v15 = vld [vmem:[%s1158_s25 + $0x8] sm:$0xff] }
  0x6b   : > { %262 = vperm.xlu1 %706, %v219_v2   ;;  %230 = vperm.xlu0 %704, %v219_v2   ;;  %v914_v8 = vmov 7   ;;  %v344_v9 = vsel %vm343_vm0, 1, %v910_v4  ;;  %v220_v10 = vlaneseq  ;;  %s214_s28 = scalar_lea.vmem [#allocation7], %s578_s7  ;;  %s583_s20 = sshll.u32 %s887_s15, 1 }
  0x6c   : > { %s584_s21 = sshll.u32 %s891_s16, 2  ;;  %s457_s2 = sshll.u32 %s214_s28, 4  ;;  %s1200_s2 = int_to_ptr.vmem [resolvable:$true] %s457_s2 }
  0x6d   : > { %v1170_v11 = vshrl.u32 %v220_v10, 7  ;;  %vm1185_vm6 = vcmp.lt.s32.totalorder %v220_v10, 256  ;;  %s453_s23 = sadd.s32 %s584_s21, %s583_s20  ;;  %s1297_s7 = sld [smem:[#allocation14_spill]] }
  0x6e   : > { %s585_s26 = sshll.u32 %s453_s23, 7  ;;  %s441_s16 = scalar_lea.sflag [#allocation4], %s1152_s3 }
  0x6f   : > { %707 = vset.pattern.permute.xlu1 %v909_v3  ;;  %705 = vset.pattern.permute.xlu0 %v910_v4  ;;  %v255_v12 = vsub.s32 3, %v1170_v11  ;;  %v222_v13 = vsub.s32 1, %v1170_v11  ;;  %v269_v16 = vsub.s32 2, %v1170_v11  ;;  %v237_v17 = vsub.s32 0, %v1170_v11  ;;  %s777_s8 = scalar_lea.vmem %s1200_s2, 256  ;;  %p1298_p3 = scmp.ne.s32.totalorder %s1282_s29, 0 }
  0x70   : > { %276 = vperm.xlu1 %707, %v219_v2   ;;  %244 = vperm.xlu0 %705, %v219_v2   ;;  %v287_v20 = vsub.s32 5, %v1170_v11  ;;  %v301_v29 = vsub.s32 4, %v1170_v11  ;;  %v323_v44 = vsub.s32 6, %v1170_v11  ;;  %p778_p0 = scmp.ne.s32.totalorder %s1200_s2, %s777_s8  ;;  %s916_s25 = smov [#allocation7]  }
  0x71   : > { %v256_v21 = vrot.slane %v217_v14, %v255_v12  ;;  %v260_v22 = vrot.slane %v218_v15, %v255_v12  ;;  %v223_v23 = vrot.slane %v217_v14, %v222_v13  ;;  %v227_v24 = vrot.slane %v218_v15, %v222_v13  ;;  %s781_s24 = sshll.u32 %s916_s25, 4  ;;  %s782_s24 = int_to_ptr.vmem [resolvable:$false] %s781_s24 }
  0x72   : > { %v270_v25 = vrot.slane %v217_v14, %v269_v16  ;;  %v274_v26 = vrot.slane %v218_v15, %v269_v16  ;;  %v238_v27 = vrot.slane %v217_v14, %v237_v17  ;;  %v242_v28 = vrot.slane %v218_v15, %v237_v17  ;;  %p779_p2 = pnand %p778_p0, %p1298_p3  ;;  %s783_s6 = scalar_lea.vmem %s782_s24, 512 }
  0x73   : > { %v288_v30 = vrot.slane %v217_v14, %v287_v20  ;;  %v292_v41 = vrot.slane %v218_v15, %v287_v20  ;;  %v302_v42 = vrot.slane %v217_v14, %v301_v29  ;;  %v306_v43 = vrot.slane %v218_v15, %v301_v29  ;;  %s1198_s15 = scalar_lea.hbm %s1297_s7, %s585_s26  ;;  %p784_p10 = scmp.lt.s32.totalorder %s1200_s2, %s782_s24 }
  0x74   : > { %708 = vset.pattern.permute.xlu1 %v911_v5  ;;  %709 = vset.pattern.permute.xlu0 %v912_v6  ;;  %v324_v59 = vrot.slane %v217_v14, %v323_v44  ;;  %v328_v60 = vrot.slane %v218_v15, %v323_v44  ;;  %p780_p5 = pneg %p779_p2  ;;  %p785_p7 = scmp.lt.s32.totalorder %s783_s6, %s777_s8 }
  0x75   : > { %294 = vperm.xlu1 %708, %v219_v2   ;;  %308 = vperm.xlu0 %709, %v219_v2  }
  0x76   : > { %p786_p1 = por %p785_p7, %p784_p10 }
  0x78   : > { %p787_p6 = pnand %p786_p1, %p780_p5 }
  0x79   : > { %710 = vset.pattern.permute.xlu1 %v913_v7  ;;  %712 = vset.pattern.permute.xlu0 %v914_v8 }
  0x7a   : > { %330 = vperm.xlu1 %710, %v219_v2  }
  0x7e   : > { %711 = vset.pattern.permute.xlu1 %v914_v8 }
  0x7f   : > { %346 = vperm.xlu1 %711, %v344_v9  }
  0xea   : > { %v263_v18 = vpop.permute.xlu1 %262  ;;  %v231_v19 = vpop.permute.xlu0 %230 }
  0xeb   : > { %v265_v31 = vmin.f32 %v256_v21, %v263_v18  ;;  %v266_v32 = vmin.f32 %v260_v22, %v263_v18  ;;  %v233_v33 = vmin.f32 %v223_v23, %v231_v19  ;;  %v234_v34 = vmin.f32 %v227_v24, %v231_v19 }
  0xef   : > { %v277_v35 = vpop.permute.xlu1 %276  ;;  %v245_v36 = vpop.permute.xlu0 %244 }
  0xf0   : > { %v279_v37 = vmax.f32 %v270_v25, %v277_v35  ;;  %v280_v38 = vmax.f32 %v274_v26, %v277_v35  ;;  %v247_v39 = vmax.f32 %v238_v27, %v245_v36  ;;  %v248_v40 = vmax.f32 %v242_v28, %v245_v36 }
  0xf1   : > { %v915_v26 = vmov 1966171168  }
  0xf2   : > { %v281_v45 = vsub.f32 %v265_v31, %v279_v37  ;;  %v282_v46 = vsub.f32 %v266_v32, %v280_v38  ;;  %v249_v47 = vsub.f32 %v233_v33, %v247_v39  ;;  %v250_v48 = vsub.f32 %v234_v34, %v248_v40 }
  0xf3   : > { %v399_v27 = vunpack.c.l.s4 %v915_v26 }
  0xf4   : > { %v283_v49 = vmax.f32 %v281_v45, 0.0  ;;  %v284_v50 = vmax.f32 %v282_v46, 0.0  ;;  %v251_v51 = vmax.f32 %v249_v47, 0.0  ;;  %v252_v52 = vmax.f32 %v250_v48, 0.0  ;;  %v295_v53 = vpop.permute.xlu1 %294  ;;  %v309_v54 = vpop.permute.xlu0 %308 }
  0xf5   : > { %v297_v55 = vmin.f32 %v288_v30, %v295_v53  ;;  %v298_v56 = vmin.f32 %v292_v41, %v295_v53  ;;  %v311_v57 = vmax.f32 %v302_v42, %v309_v54  ;;  %v312_v58 = vmax.f32 %v306_v43, %v309_v54 }
  0xf6   : > { %v317_v63 = vmul.f32 %v283_v49, %v251_v51  ;;  %v318_v0 = vmul.f32 %v284_v50, %v252_v52  ;;  %v400_v32 = vunpack.c.0.s8 %v399_v27 }
  0xf7   : > { %v313_v61 = vsub.f32 %v297_v55, %v311_v57  ;;  %v314_v62 = vsub.f32 %v298_v56, %v312_v58 }
  0xf8   : > { %v403_v37 = vsub.s32 %v400_v32, %v1170_v11 }
  0xf9   : > { %v315_v1 = vmax.f32 %v313_v61, 0.0  ;;  %v316_v2 = vmax.f32 %v314_v62, 0.0  ;;  %v331_v3 = vpop.permute.xlu1 %330 }
  0xfa   : > { %v333_v4 = vadd.f32 %v331_v3, %v324_v59  ;;  %v334_v5 = vadd.f32 %v331_v3, %v328_v60 }
  0xfb   : > { %v319_v6 = vmul.f32 %v317_v63, %v315_v1  ;;  %v320_v7 = vmul.f32 %v318_v0, %v316_v2 }
  0xfd   : > { %v335_v8 = vsub.f32 %v333_v4, %v319_v6  ;;  %v336_v9 = vsub.f32 %v334_v5, %v320_v7 }
  0xfe   : > { %v347_v16 = vpop.permute.xlu1 %346 }
  0xff   : > { %v337_v12 = vmax.f32 %v335_v8, 1e-07  ;;  %v338_v13 = vmax.f32 %v336_v9, 1e-07  ;;  %vm348_vm1 = vcmp.eq.s32.totalorder %v347_v16, 1 }
 0x101   : > { %713 = vrcp.f32 %v337_v12 }
 0x102   : > { %715 = vrcp.f32 %v338_v13 }
 0x10b   : > { %v714_v14 = vpop.eup %713 }
 0x10c   : > { %v716_v15 = vpop.eup %715  ;;  %v341_v17 = vmul.f32 %v714_v14, %v319_v6 }
 0x10d   : > { %v342_v18 = vmul.f32 %v716_v15, %v320_v7 }
 0x10e   : > { %v349_v19 = vsel %vm348_vm1, %v341_v17, -1.0 }
 0x10f   : > { %v350_v20 = vsel %vm348_vm1, %v342_v18, -1.0  ;;  %v351_v21 = vrot.slane %v349_v19, 4 }
 0x110   : > { %v357_v22 = vrot.slane %v350_v20, 4 }
 0x111   : > { %v352_v23 = vmax.f32 %v349_v19, %v351_v21 }
 0x112   : > { %v358_v24 = vmax.f32 %v350_v20, %v357_v22 }
 0x113   : > { %v353_v25 = vrot.slane %v352_v23, 2 }
 0x114   : > { %v359_v28 = vrot.slane %v358_v24, 2 }
 0x115   : > { %v354_v29 = vmax.f32 %v352_v23, %v353_v25 }
 0x116   : > { %v360_v30 = vmax.f32 %v358_v24, %v359_v28 }
 0x117   : > { %v355_v31 = vrot.slane %v354_v29, 1 }
 0x118   : > { %v361_v33 = vrot.slane %v360_v30, 1 }
 0x119   : > { %v356_v34 = vmax.f32 %v354_v29, %v355_v31 }
 0x11a   : > { %v362_v35 = vmax.f32 %v360_v30, %v361_v33 }
 0x11b   : > { %vm365_vm2 = vcmp.eq.f32.partialorder %v349_v19, %v356_v34  ;;  %v393_v36 = vmax.f32 %v356_v34, -1.0  ;;  %vm389_vm11 = vcmp.gt.f32.partialorder %v356_v34, -1.0 }
 0x11c   : > { %vm366_vm3 = vcmp.eq.f32.partialorder %v350_v20, %v362_v35  ;;  %v367_v38 = vsel %vm365_vm2, %v1170_v11, 8  ;;  %v394_v39 = vmax.f32 %v362_v35, -1.0  ;;  %vm390_vm12 = vcmp.gt.f32.partialorder %v362_v35, -1.0 }
 0x11d   : > { %v368_v40 = vsel %vm366_vm3, %v1170_v11, 8  ;;  %v369_v41 = vrot.slane %v367_v38, 4 }
 0x11e   : > { %v378_v42 = vrot.slane %v368_v40, 4  ;;  %v397_v43 = vcombine.low %v393_v36, %v394_v39 }
 0x11f   : > { %vm370_vm4 = vcmp.lt.s32.totalorder %v367_v38, %v369_v41 }
 0x120   : > { %v371_v44 = vsel %vm370_vm4, %v367_v38, %v369_v41  ;;  %vm379_vm5 = vcmp.lt.s32.totalorder %v368_v40, %v378_v42  ;;  %v404_v45 = vrot.slane %v397_v43, %v403_v37 }
 0x121   : > { %v372_v46 = vrot.slane %v371_v44, 2  ;;  %v380_v47 = vsel %vm379_vm5, %v368_v40, %v378_v42 }
 0x122   : > { %v381_v49 = vrot.slane %v380_v47, 2  ;;  %v411_v50 = vrot.slane %v404_v45, %v403_v37 }
 0x123   : > { %vm373_vm7 = vcmp.lt.s32.totalorder %v371_v44, %v372_v46 }
 0x124   : > { %v374_v11 = vsel %vm373_vm7, %v371_v44, %v372_v46  ;;  %vm382_vm8 = vcmp.lt.s32.totalorder %v380_v47, %v381_v49  ;;  %417 = vst.msk [vmem:[%s214_s28] ss:$8 sm:$0x3] %vm1185_vm6, %v411_v50 }
 0x125   : > { %v375_v51 = vrot.slane %v374_v11, 1  ;;  %v383_v52 = vsel %vm382_vm8, %v380_v47, %v381_v49 }
 0x126   : > { %v384_v53 = vrot.slane %v383_v52, 1 }
 0x127   : > { %vm376_vm9 = vcmp.lt.s32.totalorder %v374_v11, %v375_v51 }
 0x128   : > { %v377_v54 = vsel %vm376_vm9, %v374_v11, %v375_v51  ;;  %vm385_vm10 = vcmp.lt.s32.totalorder %v383_v52, %v384_v53 }
 0x129   : > { %v386_v10 = vsel %vm385_vm10, %v383_v52, %v384_v53  ;;  %v387_v55 = vcvt.s32.f32 %v377_v54 }
 0x12a   : > { %v388_v56 = vcvt.s32.f32 %v386_v10 }
 0x12b   : > { %v391_v57 = vsel %vm389_vm11, %v387_v55, 0.0 }
 0x12c   : > { %v392_v58 = vsel %vm390_vm12, %v388_v56, 0.0 }
 0x12d   : > { %v421_v59 = vcombine.low %v391_v57, %v392_v58 }
 0x12f   : > { %v428_v60 = vrot.slane %v421_v59, %v403_v37 }
 0x131   : > { %v435_v61 = vrot.slane %v428_v60, %v403_v37 }
 0x133   : > { %581 = vst.msk [vmem:[%s214_s28 + $0x1] ss:$8 sm:$0x3] %vm1185_vm6, %v435_v61 }
 0x134   : > { %790 = shalt.err (!%p787_p6)
}
 0x135   : > { %s791_s3 = scalar_lea.hbm %s1198_s15, 256  ;;  %s795_s28 = scalar_lea.hbm %s1297_s7, 1024 }
 0x136   : > { %p792_p11 = scmp.ne.s32.totalorder %s1198_s15, %s791_s3  ;;  %p796_p4 = scmp.lt.u32.totalorder %s1198_s15, %s1297_s7 }
 0x137   : > { %p797_p12 = scmp.lt.u32.totalorder %s795_s28, %s791_s3  ;;  %p799_p0 = scmp.lt.u32.totalorder %s791_s3, %s1198_s15 }
 0x138   : > { %p793_p8 = pnand %p792_p11, %p1298_p3 }
 0x139   : > { %p798_p9 = por %p797_p12, %p796_p4 }
 0x13a   : > { %p794_p13 = pneg %p793_p8 }
 0x13b   : > { %p800_p2 = por %p799_p0, %p798_p9 }
 0x13d   : > { %p801_p5 = pnand %p800_p2, %p794_p13 }
 0x13f   : > { %804 = shalt.err (!%p801_p5)
}
 0x140   : > { %592 = dma.vmem_to_hbm [thread:$0]  (%p1298_p3), %s1200_s2, 256, %s1198_s15, %s441_s16  }
 0x141 PF: > { %s1299_s23 = sld [smem:[#allocation11_spill]]  ;;  %p606_p10 = scmp.ge.s32.totalorder %s903_s19, 2 }
 0x142   : > { %p1300_p7 = scmp.ne.s32.totalorder %s1283_s4, 0 }
 0x144   : > { %p602_p1 = pnand %p606_p10, %p1300_p7 }
 0x147   : > { %s469_s26 = sand.u32 1, %s1299_s23  }
 0x148   : > { %s470_s27 = scalar_lea.sflag [#allocation4], %s469_s26 }
 0x149   : > { %858 = dma.done.wait (!%p602_p1), %s470_s27, 256  }
 0x14a   : > { %860 = vsyncadd (!%p602_p1), %s470_s27, 4294967040  ;;  %s21_s19 = sadd.s32 1, %s903_s19   ;;  %s1301_s29 = sld [smem:[#allocation12_spill]] }
 0x14b   : > { %p18_p6 = scmp.ge.s32.totalorder %s21_s19, 6   ;;  %s1302_s2 = sld [smem:[#allocation13_spill]] }
 0x14c   : > { %s1303_s9 = smov %s867_s10  ;;  %s1304_s10 = smov %s871_s11 }
 0x14d   : > { %s1305_s11 = smov %s1097_s22  ;;  %s1306_s12 = smov %s879_s13 }
 0x14e   : > { %s1307_s13 = smov %s883_s14  ;;  %s1308_s14 = smov %s1036_s5 }
 0x14f   : > { %s1309_s15 = smov %s895_s17  ;;  %s1310_s16 = smov %s899_s18 }
 0x150   : > { %s1311_s17 = smov %s1301_s29  ;;  %20 = sbr.rel (!%p18_p6) target bundleno = 13 (0xd), region = 87 }
 0x151   : > { %s1312_s18 = smov %s1302_s2 }
 0x157   :  { %475 = vsyncpa [#allocation3], 1 }
 0x158   :  { %477 = vsyncpa [#allocation3 + $0x1], 1 }
 0x159   :  { %478 = vsyncpa [#allocation6], 1 }
 0x15a   :  { %480 = vsyncpa [#allocation6 + $0x1], 1 }
 0x15b   :  { %481 = vsyncpa [#allocation4], 1 }
 0x15c   :  { %483 = vsyncpa [#allocation4 + $0x1], 1 }

</bundles_post_ra>
